<compile_context>
chip_gen: v5e
topology: v5e:2x2
jax: 0.10.0
libtpu: 0.0.40
codegen_flags: <defaults>
</compile_context>

<pallas_src>
import functools

import jax
import jax.numpy as jnp
import numpy as np
from jax.experimental import pallas as pl
from jax.experimental.pallas import tpu as pltpu


def _qgnn_kernel(x_ref, params_ref, out_ref, *, n_qubits: int, n_pad: int):
    """x: (1, n_pad) RY angles (zero-padded lanes); params: (n+1, n_pad) = [W^T rows; bias]."""
    n = n_qubits

    # --- quantum layer ------------------------------------------------------
    half = x_ref[...] * 0.5                      # (1, n_pad); padded lanes are 0.0
    cos_r = jnp.cos(half)                        # one vectorized EUP push (padded -> 1.0)
    sin_r = jnp.sin(half)                        # one vectorized EUP push (padded -> 0.0)

    # Bit-select (built in-kernel, n is static): pre-CX bit i of output index c is
    # bit i of (c ^ (c << 1)).  Padded lanes (i >= n) select cos(0) = 1.
    c_idx = jax.lax.broadcasted_iota(jnp.int32, (n, n_pad), 0)   # output state c (sublanes)
    q_idx = jax.lax.broadcasted_iota(jnp.int32, (n, n_pad), 1)   # qubit index i (lanes)
    bit = ((c_idx ^ (c_idx << 1)) >> jnp.minimum(q_idx, 31)) & 1
    take_sin = jnp.logical_and(bit == 1, q_idx < n)

    # factor[c, i] = cos(x_i/2) or sin(x_i/2); padded lanes are the identity 1.0.
    factor = jnp.where(take_sin, sin_r, cos_r)                   # (n, n_pad)

    # Log2-step lane-product reduction (XLU roll + VPU mul). After log2(n_pad) steps
    # every lane of row c holds prod_i factor[c, i] == amp(c): no lane broadcast needed.
    amp = factor
    shift = 1
    while shift < n_pad:
        amp = amp * pltpu.roll(amp, shift, axis=1)
        shift *= 2

    # RZ gates contribute pure phases e^{+-i w/2}; |amp|^2 is unaffected.
    reduced = amp * amp                                          # probs[c], all lanes, (n, n_pad)

    # --- fc: logits = reduced @ W.T + b  (VPU multiply + XLU sublane-sum) ----
    params = params_ref[...]                                     # (n+1, n_pad)
    w = params[:n, :]                                            # (n, n_pad)  == W.T, lane-padded
    bias = params[n:n + 1, :]                                    # (1, n_pad)
    logits = jnp.sum(reduced * w, axis=0, keepdims=True) + bias  # (1, n_pad), lane-dense
    out_ref[...] = logits.astype(out_ref.dtype)


def prepare_fc_params(fc_weight, fc_bias, *, n_qubits: int):
    """Model-init-time prep: pack W^T (zero lane-padded) and bias into one slab."""
    nn2 = n_qubits * n_qubits
    n_pad = max(128, ((nn2 + 127) // 128) * 128)
    slab = jnp.zeros((n_qubits + 1, n_pad), jnp.float32)
    slab = slab.at[:n_qubits, :nn2].set(jnp.asarray(fc_weight, jnp.float32).T)
    slab = slab.at[n_qubits, :nn2].set(jnp.asarray(fc_bias, jnp.float32).reshape(nn2))
    return slab


@functools.partial(jax.jit, static_argnames=("n_qubits",))
def qgnn_forward(x, params_slab, *, n_qubits: int):
    """x: node features (flattened to n_qubits RY angles); returns (n_qubits**2,) logits."""
    nn2 = n_qubits * n_qubits
    n_pad = params_slab.shape[1]

    x_flat = jnp.reshape(x, (-1,)).astype(jnp.float32)
    assert x_flat.shape[0] == n_qubits, (
        f"expected exactly {n_qubits} input features, got {x_flat.shape[0]}"
    )
    # One lane-dense padded angle row (padded lanes 0 -> cos(0)=1 identity).
    x_row = jnp.zeros((1, n_pad), jnp.float32).at[0, :n_qubits].set(x_flat)

    kernel = functools.partial(_qgnn_kernel, n_qubits=n_qubits, n_pad=n_pad)
    cost = pl.CostEstimate(
        flops=12 * n_qubits * n_pad,            # select + 2*log2 reduction + square + fc
        transcendentals=2 * n_pad,              # cos + sin over one padded row
        bytes_accessed=4 * (n_pad * (n_qubits + 3)),
    )
    out = pl.pallas_call(
        kernel,
        out_shape=jax.ShapeDtypeStruct((1, n_pad), jnp.float32),
        in_specs=[
            pl.BlockSpec(memory_space=pltpu.MemorySpace.VMEM),
            pl.BlockSpec(memory_space=pltpu.MemorySpace.VMEM),
        ],
        out_specs=pl.BlockSpec(memory_space=pltpu.MemorySpace.VMEM),
        cost_estimate=cost,
    )(x_row, params_slab)
    return out[0, :nn2]


def _statevector_reference(x, fc_weight, fc_bias, n):
    """Brute-force float64 reference: full 2^n statevector, CX permutation, linear head."""
    xs = np.asarray(x, np.float64).reshape(-1)
    dim = 1 << n
    amp = np.empty(dim, np.float64)
    for b in range(dim):
        a = 1.0
        for i in range(n):
            a *= np.sin(xs[i] / 2) if (b >> i) & 1 else np.cos(xs[i] / 2)
        amp[b] = a
    # CX chain CX(i, i+1): basis permutation b -> b with bit i+1 flipped iff bit i set.
    state = amp
    for i in range(n - 1):
        new = np.zeros_like(state)
        for b in range(dim):
            nb = b ^ (1 << (i + 1)) if (b >> i) & 1 else b
            new[nb] += state[b]
        state = new
    probs = state ** 2                       # RZ phases leave magnitudes unchanged
    reduced = probs[:n]
    w = np.asarray(fc_weight, np.float64)
    bb = np.asarray(fc_bias, np.float64)
    return reduced @ w.T + bb


if __name__ == "__main__":
    num_nodes = 8  # n_qubits = num_nodes

    key = jax.random.PRNGKey(0)
    k_x, k_qw, k_w, k_b = jax.random.split(key, 4)

    # data.x: one scalar feature per node (flattened to n_qubits RY angles).
    data_x = jax.random.normal(k_x, (num_nodes, 1), dtype=jnp.float32)

    # QiskitQuantumLayer.weights (RZ angles): created for shape fidelity only; they are
    # pure phases, so the module output provably does not depend on them.
    quantum_weights = jax.random.normal(k_qw, (num_nodes,), dtype=jnp.float32)
    del quantum_weights

    # nn.Linear(num_nodes, num_nodes*num_nodes) parameters, deterministic init.
    bound = 1.0 / float(num_nodes) ** 0.5
    fc_weight = jax.random.uniform(
        k_w, (num_nodes * num_nodes, num_nodes), jnp.float32, -bound, bound
    )
    fc_bias = jax.random.uniform(
        k_b, (num_nodes * num_nodes,), jnp.float32, -bound, bound
    )

    # Model-init-time parameter packing, then forward.
    params_slab = prepare_fc_params(fc_weight, fc_bias, n_qubits=num_nodes)
    logits = qgnn_forward(data_x, params_slab, n_qubits=num_nodes)
    logits = jax.block_until_ready(logits)
    assert logits.shape == (num_nodes * num_nodes,)

    # Numerical check against a brute-force statevector simulation of the circuit.
    ref = _statevector_reference(
        np.asarray(data_x), np.asarray(fc_weight), np.asarray(fc_bias), num_nodes
    )
    max_err = float(np.max(np.abs(np.asarray(logits, np.float64) - ref)))
    assert max_err < 1e-4, f"mismatch vs statevector reference: max_err={max_err}"

    print("KERNEL_OK")
</pallas_src>

<mosaic_0001>
module attributes {stable_mosaic.version = 11 : i64} {
  func.func @_qgnn_kernel(%arg0: memref<1x128xf32, #tpu.memory_space<vmem>>, %arg1: memref<9x128xf32, #tpu.memory_space<vmem>>, %arg2: memref<1x128xf32, #tpu.memory_space<vmem>>) attributes {dimension_semantics = [], scalar_prefetch = 0 : i64, scratch_operands = 0 : i64, tpu.core_type = #tpu.core_type<tc>} {
    %c0 = arith.constant 0 : index
    %c0_0 = arith.constant 0 : index
    %0 = vector.load %arg0[%c0, %c0_0] : memref<1x128xf32, #tpu.memory_space<vmem>>, vector<1x128xf32>
    %cst = arith.constant 5.000000e-01 : f32
    %1 = vector.broadcast %cst : f32 to vector<1x128xf32>
    %2 = arith.mulf %0, %1 : vector<1x128xf32>
    %3 = math.cos %2 : vector<1x128xf32>
    %4 = math.sin %2 : vector<1x128xf32>
    %5 = tpu.iota {dimensions = array<i32: 0>} : vector<8x128xi32>
    %6 = tpu.iota {dimensions = array<i32: 1>} : vector<8x128xi32>
    %c1_i32 = arith.constant 1 : i32
    %7 = vector.broadcast %c1_i32 : i32 to vector<8x128xi32>
    %8 = arith.shli %5, %7 : vector<8x128xi32>
    %9 = arith.xori %5, %8 : vector<8x128xi32>
    %c31_i32 = arith.constant 31 : i32
    %10 = vector.broadcast %c31_i32 : i32 to vector<8x128xi32>
    %11 = arith.minsi %6, %10 : vector<8x128xi32>
    %12 = arith.shrsi %9, %11 : vector<8x128xi32>
    %c1_i32_1 = arith.constant 1 : i32
    %13 = vector.broadcast %c1_i32_1 : i32 to vector<8x128xi32>
    %14 = arith.andi %12, %13 : vector<8x128xi32>
    %c1_i32_2 = arith.constant 1 : i32
    %15 = vector.broadcast %c1_i32_2 : i32 to vector<8x128xi32>
    %16 = arith.cmpi eq, %14, %15 : vector<8x128xi32>
    %c8_i32 = arith.constant 8 : i32
    %17 = vector.broadcast %c8_i32 : i32 to vector<8x128xi32>
    %18 = arith.cmpi slt, %6, %17 : vector<8x128xi32>
    %19 = arith.andi %16, %18 : vector<8x128xi1>
    %20 = vector.shape_cast %4 : vector<1x128xf32> to vector<1x128xf32>
    %21 = vector.broadcast %20 : vector<1x128xf32> to vector<8x128xf32>
    %22 = vector.shape_cast %3 : vector<1x128xf32> to vector<1x128xf32>
    %23 = vector.broadcast %22 : vector<1x128xf32> to vector<8x128xf32>
    %24 = arith.select %19, %21, %23 : vector<8x128xi1>, vector<8x128xf32>
    %c1_i32_3 = arith.constant 1 : i32
    %25 = tpu.dynamic_rotate %24 by %c1_i32_3 dim 1 : vector<8x128xf32>, i32 -> vector<8x128xf32>
    %26 = arith.mulf %24, %25 : vector<8x128xf32>
    %c2_i32 = arith.constant 2 : i32
    %27 = tpu.dynamic_rotate %26 by %c2_i32 dim 1 : vector<8x128xf32>, i32 -> vector<8x128xf32>
    %28 = arith.mulf %26, %27 : vector<8x128xf32>
    %c4_i32 = arith.constant 4 : i32
    %29 = tpu.dynamic_rotate %28 by %c4_i32 dim 1 : vector<8x128xf32>, i32 -> vector<8x128xf32>
    %30 = arith.mulf %28, %29 : vector<8x128xf32>
    %c8_i32_4 = arith.constant 8 : i32
    %31 = tpu.dynamic_rotate %30 by %c8_i32_4 dim 1 : vector<8x128xf32>, i32 -> vector<8x128xf32>
    %32 = arith.mulf %30, %31 : vector<8x128xf32>
    %c16_i32 = arith.constant 16 : i32
    %33 = tpu.dynamic_rotate %32 by %c16_i32 dim 1 : vector<8x128xf32>, i32 -> vector<8x128xf32>
    %34 = arith.mulf %32, %33 : vector<8x128xf32>
    %c32_i32 = arith.constant 32 : i32
    %35 = tpu.dynamic_rotate %34 by %c32_i32 dim 1 : vector<8x128xf32>, i32 -> vector<8x128xf32>
    %36 = arith.mulf %34, %35 : vector<8x128xf32>
    %c64_i32 = arith.constant 64 : i32
    %37 = tpu.dynamic_rotate %36 by %c64_i32 dim 1 : vector<8x128xf32>, i32 -> vector<8x128xf32>
    %38 = arith.mulf %36, %37 : vector<8x128xf32>
    %39 = arith.mulf %38, %38 : vector<8x128xf32>
    %c0_5 = arith.constant 0 : index
    %c0_6 = arith.constant 0 : index
    %40 = vector.load %arg1[%c0_5, %c0_6] : memref<9x128xf32, #tpu.memory_space<vmem>>, vector<9x128xf32>
    %41 = vector.extract_strided_slice %40 {offsets = [0, 0], sizes = [8, 128], strides = [1, 1]} : vector<9x128xf32> to vector<8x128xf32>
    %42 = vector.extract_strided_slice %40 {offsets = [8, 0], sizes = [1, 128], strides = [1, 1]} : vector<9x128xf32> to vector<1x128xf32>
    %43 = arith.mulf %39, %41 : vector<8x128xf32>
    %cst_7 = arith.constant dense<0.000000e+00> : vector<128xf32>
    %44 = vector.multi_reduction <add>, %43, %cst_7 [0] : vector<8x128xf32> to vector<128xf32>
    %45 = vector.shape_cast %44 : vector<128xf32> to vector<1x128xf32>
    %46 = arith.addf %45, %42 : vector<1x128xf32>
    %c0_8 = arith.constant 0 : index
    %c0_9 = arith.constant 0 : index
    %47 = vector.load %arg2[%c0_8, %c0_9] : memref<1x128xf32, #tpu.memory_space<vmem>>, vector<1x128xf32>
    tpu.vector_store %arg2[%c0_8, %c0_9], %46 {strides = array<i32>} : memref<1x128xf32, #tpu.memory_space<vmem>>, vector<1x128xf32>,
    return
  }
}

</mosaic_0001>

<bundles_post_ra>
// kernel: qgnn_forward.1
= control target key start
LH: loop header
LB: loop body
LE: loop exit
PB: predicated region body
PF: predicated region fallthrough
CT: control target
= control target key end

     0   :  { %7 = vsyncpa [#allocation3], 0  ;;  %s444_s12 = smov [#allocation2]   ;;  %s445_s14 = smov 128   ;;  %s532_s0 = inlined_call_operand.vmem [shape: f32[1,128], index: 0, kind: input, shape index: {}]   ;;  %s533_s1 = inlined_call_operand.hbm [shape: f32[9,128], index: 1, kind: input, shape index: {}]   ;;  %s534_s2 = inlined_call_operand.vmem [shape: f32[1,128], index: 2, kind: output, shape index: {}]  }
   0x1   :  { %s14_s11 = sshll.u32 %s533_s1, 4  ;;  %s16_s13 = sshll.u32 %s444_s12, 4  ;;  %s15_s11 = int_to_ptr.hbm [resolvable:$true] %s14_s11  ;;  %s17_s13 = int_to_ptr.vmem [resolvable:$true] %s16_s13 }
   0x2   :  { %s446_s15 = smov 8  }
   0x3   :  { %22 = dma.hbm_to_vmem [thread:$0]  %s15_s11, 256, %s17_s13, [#allocation3], %s445_s14, %s445_s14, %s446_s15  }
   0x4   :  { %442 = dma.done.wait [#allocation3], 256  }
   0x5   :  { %443 = vsyncadd [#allocation3], 4294967040  ;;  %v27_v0 = vld [vmem:[%s532_s0] sm:$0x1]  ;;  %v447_v13 = vmov 683565275  }
   0x6   :  { %v482_v1 = vmul.f32 0.5, %v27_v0  ;;  %v448_v15 = vmov 2475754826   ;;  %v449_v17 = vmov 2131351028   ;;  %s454_s0 = smov 1  }
   0x7   :  { %v450_v19 = vmov 2102212464   ;;  %v451_v21 = vmov 920167782   ;;  %v452_v27 = vmov 1326507024  }
   0x8   :  { %v32_v2 = vand.u32 2139095040, %v482_v1  ;;  %v29_v4 = vand.u32 2147483647, %v482_v1  ;;  %vm31_vm12 = vcmp.lt.s32.totalorder %v482_v1, 0  ;;  %s455_s1 = smov 2   ;;  %s456_s18 = smov 4  }
   0x9   :  { %s457_s19 = smov 16   ;;  %s458_s20 = smov 32  }
   0xa   :  { %v33_v3 = vshrl.u32 %v32_v2, 23  ;;  %v36_v7 = vand.u32 8388607, %v29_v4  ;;  %v453_v2 = vmov 0   ;;  %vm30_vm13 = vcmp.le.f32.partialorder %v29_v4, 0.7853982 }
   0xb   :  { %s459_s21 = smov 64  }
   0xc   :  { %v396_v5 = vadd.s32 4294967169, %v33_v3  ;;  %v37_v10 = vor.u32 8388608, %v36_v7 }
   0xe   :  { %v39_v6 = vadd.s32 1, %v396_v5  ;;  %v491_v29 = vshll.u32 %v37_v10, 8 }
  0x10   :  { %vm40_vm0 = vcmp.gt.s32.totalorder %v39_v6, 0  ;;  %v78_v41 = vand.u32 65535, %v491_v29  ;;  %v79_v42 = vshrl.u32 %v491_v29, 16 }
  0x11   :  { %v41_v8 = vsel %vm40_vm0, %v39_v6, 0 }
  0x12   :  { %v43_v9 = vand.u32 31, %v41_v8  ;;  %v488_v11 = vshrl.u32 %v41_v8, 5 }
  0x14   :  { %v44_v12 = vsub.s32 32, %v43_v9  ;;  %v46_v14 = vshll.u32 %v447_v13, %v43_v9  ;;  %v49_v16 = vshll.u32 %v448_v15, %v43_v9  ;;  %v52_v18 = vshll.u32 %v449_v17, %v43_v9 }
  0x15   :  { %v55_v20 = vshll.u32 %v450_v19, %v43_v9  ;;  %v58_v22 = vshll.u32 %v451_v21, %v43_v9  ;;  %vm61_vm1 = vcmp.lt.s32.totalorder %v488_v11, 1  ;;  %vm64_vm2 = vcmp.lt.s32.totalorder %v488_v11, 4 }
  0x16   :  { %v47_v23 = vshrl.u32 %v448_v15, %v44_v12  ;;  %v50_v24 = vshrl.u32 %v449_v17, %v44_v12  ;;  %v53_v25 = vshrl.u32 %v450_v19, %v44_v12  ;;  %v56_v26 = vshrl.u32 %v451_v21, %v44_v12 }
  0x17   :  { %v59_v28 = vshrl.u32 %v452_v27, %v44_v12  ;;  %vm63_vm3 = vcmp.lt.s32.totalorder %v488_v11, 3  ;;  %vm62_vm4 = vcmp.lt.s32.totalorder %v488_v11, 2  ;;  %v45_v49 = vshrl.u32 %v447_v13, %v44_v12 }
  0x18   :  { %v48_v30 = vor.u32 %v47_v23, %v46_v14  ;;  %v51_v31 = vor.u32 %v50_v24, %v49_v16  ;;  %v54_v32 = vor.u32 %v53_v25, %v52_v18  ;;  %v57_v33 = vor.u32 %v56_v26, %v55_v20 }
  0x19   :  { %v60_v34 = vor.u32 %v59_v28, %v58_v22 }
  0x1a   :  { %v69_v35 = vsel %vm61_vm1, %v48_v30, %v51_v31  ;;  %v73_v36 = vsel %vm61_vm1, %v51_v31, %v54_v32  ;;  %v70_v37 = vsel %vm64_vm2, %v57_v33, 920167782  ;;  %v65_v62 = vsel %vm61_vm1, %v45_v49, %v48_v30 }
  0x1b   :  { %v74_v38 = vsel %vm64_vm2, %v60_v34, 1326507024  ;;  %v71_v39 = vsel %vm63_vm3, %v54_v32, %v70_v37  ;;  %v66_v0 = vsel %vm64_vm2, %v54_v32, 2102212464 }
  0x1c   :  { %v75_v40 = vsel %vm63_vm3, %v57_v33, %v74_v38  ;;  %v72_v43 = vsel %vm62_vm4, %v69_v35, %v71_v39  ;;  %v67_v13 = vsel %vm63_vm3, %v51_v31, %v66_v0 }
  0x1d   :  { %v76_v44 = vsel %vm62_vm4, %v73_v36, %v75_v40  ;;  %v102_v47 = vand.u32 65535, %v72_v43  ;;  %v103_v48 = vshrl.u32 %v72_v43, 16  ;;  %v68_v21 = vsel %vm62_vm4, %v65_v62, %v67_v13 }
  0x1e   :  { %v80_v45 = vand.u32 65535, %v76_v44  ;;  %v81_v46 = vshrl.u32 %v76_v44, 16  ;;  %v122_v25 = vmul.u32 %v491_v29, %v68_v21 }
  0x1f   :  { %v104_v53 = vmul.u32 %v102_v47, %v78_v41  ;;  %v105_v54 = vmul.u32 %v103_v48, %v78_v41  ;;  %v106_v55 = vmul.u32 %v102_v47, %v79_v42  ;;  %v107_v59 = vmul.u32 %v103_v48, %v79_v42 }
  0x20   :  { %v82_v50 = vmul.u32 %v80_v45, %v78_v41  ;;  %v83_v51 = vmul.u32 %v81_v46, %v78_v41  ;;  %v84_v52 = vmul.u32 %v80_v45, %v79_v42  ;;  %v85_v56 = vmul.u32 %v81_v46, %v79_v42 }
  0x21   :  { %v108_v60 = vshll.u32 %v105_v54, 16  ;;  %v110_v61 = vshll.u32 %v106_v55, 16  ;;  %v109_v10 = vshrl.u32 %v105_v54, 16  ;;  %v111_v17 = vshrl.u32 %v106_v55, 16 }
  0x22   :  { %v86_v57 = vshll.u32 %v83_v51, 16  ;;  %v88_v58 = vshll.u32 %v84_v52, 16  ;;  %v87_v6 = vshrl.u32 %v83_v51, 16  ;;  %v89_v14 = vshrl.u32 %v84_v52, 16 }
  0x23   :  { %vm112_vm6 = vc.u32 %v104_v53, %v108_v60  ;;  %v114_v5 = vadd.s32 %v108_v60, %v104_v53  ;;  %v338_v48 = vlaneseq }
  0x24   :  { %vm90_vm5 = vc.u32 %v82_v50, %v86_v57  ;;  %v92_v63 = vadd.s32 %v86_v57, %v82_v50  ;;  %v113_v8 = vsel %vm112_vm6, 1, %v453_v2 }
  0x25   :  { %v91_v3 = vsel %vm90_vm5, 1, %v453_v2  ;;  %v115_v12 = vadd.s32 %v113_v8, %v107_v59  ;;  %vm116_vm8 = vc.u32 %v114_v5, %v110_v61  ;;  %v118_v20 = vadd.s32 %v114_v5, %v110_v61 }
  0x26   :  { %v93_v7 = vadd.s32 %v91_v3, %v85_v56  ;;  %vm94_vm7 = vc.u32 %v92_v63, %v88_v58  ;;  %v117_v16 = vsel %vm116_vm8, 1, %v453_v2  ;;  %v339_v52 = vshrl.u32 %v338_v48, 7 }
  0x27   :  { %v95_v9 = vsel %vm94_vm7, 1, %v453_v2  ;;  %v119_v18 = vadd.s32 %v117_v16, %v115_v12  ;;  %v341_v56 = vand.u32 127, %v338_v48  ;;  %vm172_vm5 = vweird.f32 %v482_v1 }
  0x28   :  { %v97_v15 = vadd.s32 %v95_v9, %v93_v7  ;;  %v342_v58 = vshll.u32 %v339_v52, 1 }
  0x29   :  { %v120_v22 = vadd.s32 %v119_v18, %v109_v10  ;;  %vm344_vm14 = vcmp.lt.s32.totalorder %v341_v56, 31  ;;  %vm349_vm7 = vcmp.lt.s32.totalorder %v341_v56, 8 }
  0x2a   :  { %v98_v19 = vadd.s32 %v97_v15, %v87_v6  ;;  %v343_v2 = vxor.u32 %v342_v58, %v339_v52  ;;  %v345_v4 = vsel %vm344_vm14, %v341_v56, 31 }
  0x2b   :  { %v121_v24 = vadd.s32 %v120_v22, %v111_v17 }
  0x2c   :  { %v99_v23 = vadd.s32 %v98_v19, %v89_v14  ;;  %v346_v10 = vshra.s32 %v343_v2, %v345_v4 }
  0x2d   :  { %v125_v26 = vadd.s32 1, %v121_v24 }
  0x2e   :  { %vm124_vm9 = vc.u32 %v99_v23, %v118_v20  ;;  %v123_v11 = vadd.s32 %v118_v20, %v99_v23  ;;  %v347_v16 = vand.u32 1, %v346_v10 }
  0x2f   :  { %v126_v27 = vsel %vm124_vm9, %v125_v26, %v121_v24 }
  0x30   :  { %v127_v28 = vadd.s32 %v126_v27, %v122_v25  ;;  %vm348_vm6 = vcmp.eq.s32.totalorder %v347_v16, 1 }
  0x31   :  { %vm350_vm8 = vmand %vm348_vm6, %vm349_vm7 }
  0x32   :  { %v128_v30 = vadd.s32 536870912, %v127_v28 }
  0x34   :  { %v129_v31 = vshrl.u32 %v128_v30, 30 }
  0x36   :  { %v130_v32 = vshll.u32 %v129_v31, 30  ;;  %v153_v50 = vsub.s32 4, %v129_v31 }
  0x38   :  { %v131_v33 = vsub.s32 %v127_v28, %v130_v32  ;;  %v154_v54 = vsel %vm31_vm12, %v153_v50, %v129_v31 }
  0x39   :  { %v156_v59 = vsel %vm30_vm13, 0, %v154_v54 }
  0x3a   :  { %vm132_vm10 = vcmp.lt.s32.totalorder %v131_v33, 0  ;;  %v133_v34 = vsub.s32 0, %v131_v33  ;;  %v327_v0 = vadd.s32 3, %v156_v59  ;;  %v173_v8 = vand.u32 3, %v156_v59 }
  0x3c   :  { %v134_v35 = vsel %vm132_vm10, %v133_v34, %v131_v33  ;;  %v328_v9 = vand.u32 3, %v327_v0  ;;  %vm178_vm15 = vcmp.eq.s32.totalorder %v173_v8, 2  ;;  %vm174_vm1 = vcmp.lt.s32.totalorder %v173_v8, 2 }
  0x3d   :  { %v135_v36 = vclz %v134_v35  ;;  %vm175_vm2 = vcmp.eq.s32.totalorder %v173_v8, 0 }
  0x3e   :  { %vm333_vm0 = vcmp.eq.s32.totalorder %v328_v9, 2  ;;  %vm330_vm3 = vcmp.eq.s32.totalorder %v328_v9, 0  ;;  %vm329_vm4 = vcmp.lt.s32.totalorder %v328_v9, 2 }
  0x3f   :  { %v397_v37 = vadd.s32 4294967294, %v135_v36 }
  0x41   :  { %vm398_vm11 = vcmp.lt.s32.totalorder %v397_v37, 0 }
  0x42   :  { %v138_v38 = vsel %vm398_vm11, 0, %v397_v37 }
  0x43   :  { %v139_v39 = vsub.s32 32, %v138_v38  ;;  %v140_v40 = vshll.u32 %v131_v33, %v138_v38  ;;  %v143_v41 = vsub.s32 4294967266, %v138_v38 }
  0x45   :  { %v141_v29 = vshrl.u32 %v123_v11, %v139_v39  ;;  %v144_v42 = vadd.s32 127, %v143_v41 }
  0x47   :  { %v142_v43 = vor.u32 %v141_v29, %v140_v40  ;;  %v145_v44 = vshll.u32 %v144_v42, 23 }
  0x49   :  { %v146_v45 = vor.u32 4788187, %v145_v44  ;;  %v149_v46 = vcvt.s32.f32 %v142_v43  ;;  %v380_v43 = vld [vmem:[#allocation2] sm:$0xff] }
  0x4b   :  { %v147_v47 = vand.u32 2147483647, %v146_v45 }
  0x4d   :  { %v150_v49 = vmul.f32 %v149_v46, %v147_v47 }
  0x4f   :  { %v151_v51 = vxor.u32 2147483648, %v150_v49 }
  0x51   :  { %v152_v53 = vsel %vm31_vm12, %v151_v51, %v150_v49  ;;  %v381_v51 = vld [vmem:[#allocation2 + $0x8] sm:$0x1] }
  0x52   :  { %v155_v55 = vsel %vm30_vm13, %v482_v1, %v152_v53 }
  0x53   :  { %v157_v57 = vmul.f32 %v155_v55, %v155_v55 }
  0x55   :  { %v158_v60 = vmul.f32 -0.001358992, %v157_v57  ;;  %v165_v61 = vmul.f32 -0.00019511016, %v157_v57 }
  0x57   :  { %v159_v62 = vadd.f32 0.041655596, %v158_v60  ;;  %v166_v63 = vadd.f32 0.008332121, %v165_v61 }
  0x59   :  { %v160_v3 = vmul.f32 %v159_v62, %v157_v57  ;;  %v167_v5 = vmul.f32 %v166_v63, %v157_v57 }
  0x5b   :  { %v161_v6 = vadd.f32 -0.4999988, %v160_v3  ;;  %v168_v7 = vadd.f32 -0.16666654, %v167_v5 }
  0x5d   :  { %v162_v12 = vmul.f32 %v161_v6, %v157_v57  ;;  %v169_v13 = vmul.f32 %v168_v7, %v157_v57 }
  0x5f   :  { %v163_v14 = vadd.f32 1.0, %v162_v12  ;;  %v170_v15 = vadd.f32 1.0, %v169_v13 }
  0x61   :  { %v171_v17 = vmul.f32 %v170_v15, %v155_v55  ;;  %v179_v18 = vxor.u32 2147483648, %v163_v14 }
  0x63   :  { %v176_v19 = vxor.u32 2147483648, %v171_v17  ;;  %v180_v20 = vsel %vm178_vm15, %v179_v18, %v171_v17  ;;  %v335_v21 = vsel %vm333_vm0, %v179_v18, %v171_v17 }
  0x65   :  { %v177_v22 = vsel %vm175_vm2, %v163_v14, %v176_v19  ;;  %v332_v23 = vsel %vm330_vm3, %v163_v14, %v176_v19 }
  0x66   :  { %v181_v24 = vsel %vm174_vm1, %v177_v22, %v180_v20  ;;  %v336_v25 = vsel %vm329_vm4, %v332_v23, %v335_v21 }
  0x67   :  { %v182_v26 = vsel %vm172_vm5, nan, %v181_v24  ;;  %v337_v27 = vsel %vm172_vm5, nan, %v336_v25 }
  0x68   :  { %v352_v28 = vperm.slane %v337_v27, 0  ;;  %v355_v30 = vperm.slane %v182_v26, 0 }
  0x6a   :  { %v357_v31 = vsel %vm350_vm8, %v352_v28, %v355_v30 }
  0x6b   :  { %358 = vrot.lane.b32.xlu0 %v357_v31, %s454_s0 }
  0xdd   :  { %v359_v32 = vpop.permute.xlu0 %358 }
  0xde   :  { %v360_v33 = vmul.f32 %v359_v32, %v357_v31 }
  0xe0   :  { %361 = vrot.lane.b32.xlu0 %v360_v33, %s455_s1 }
 0x152   :  { %v362_v34 = vpop.permute.xlu0 %361 }
 0x153   :  { %v363_v1 = vmul.f32 %v362_v34, %v360_v33 }
 0x155   :  { %364 = vrot.lane.b32.xlu1 %v363_v1, %s456_s18 }
 0x1c7   :  { %v365_v35 = vpop.permute.xlu1 %364 }
 0x1c8   :  { %v366_v36 = vmul.f32 %v365_v35, %v363_v1 }
 0x1ca   :  { %367 = vrot.lane.b32.xlu1 %v366_v36, %s446_s15 }
 0x23c   :  { %v368_v37 = vpop.permute.xlu1 %367 }
 0x23d   :  { %v369_v11 = vmul.f32 %v368_v37, %v366_v36 }
 0x23f   :  { %370 = vrot.lane.b32.xlu2 %v369_v11, %s457_s19 }
 0x299   :  { %v371_v38 = vpop.permute.xlu2 %370 }
 0x29a   :  { %v372_v39 = vmul.f32 %v371_v38, %v369_v11 }
 0x29c   :  { %373 = vrot.lane.b32.xlu2 %v372_v39, %s458_s20 }
 0x2f6   :  { %v374_v40 = vpop.permute.xlu2 %373 }
 0x2f7   :  { %v375_v41 = vmul.f32 %v374_v40, %v372_v39 }
 0x2f9   :  { %376 = vrot.lane.b32.xlu0 %v375_v41, %s459_s21 }
 0x36b   :  { %v377_v29 = vpop.permute.xlu0 %376 }
 0x36c   :  { %v378_v42 = vmul.f32 %v377_v29, %v375_v41 }
 0x36e   :  { %v379_v44 = vmul.f32 %v378_v42, %v378_v42 }
 0x370   :  { %v382_v45 = vmul.f32 %v380_v43, %v379_v44 }
 0x372   :  { %v383_v46 = vrot.slane %v382_v45, 4 }
 0x374   :  { %v384_v47 = vadd.f32 %v383_v46, %v382_v45 }
 0x376   :  { %v385_v48 = vrot.slane %v384_v47, 2 }
 0x378   :  { %v386_v49 = vadd.f32 %v385_v48, %v384_v47 }
 0x37a   :  { %v387_v50 = vrot.slane %v386_v49, 1 }
 0x37c   :  { %v388_v52 = vadd.f32 %v387_v50, %v386_v49 }
 0x37e   :  { %v389_v53 = vadd.f32 %v388_v52, %v381_v51 }
 0x380   :  { %390 = vst [vmem:[%s534_s2] sm:$0x1] %v389_v53 }
 0x381   :  { %395 = vsyncpa [#allocation3], 1 }

</bundles_post_ra>
